<compile_context>
chip_gen: v7x
topology: tpu7x:2x2x1
jax: 0.10.0
libtpu: 0.0.40
codegen_flags: <defaults>
</compile_context>

<pallas_src>
import functools

import jax
import jax.numpy as jnp
from jax.experimental import pallas as pl
from jax.experimental.pallas import tpu as pltpu


def _neg_pearson_kernel(preds_ref, labels_ref, loss_ref,
                        sx_ref, sy_ref, sxy_ref, sx2_ref, sy2_ref,
                        *, T, TT, nseg, ragged_t):
    k = pl.program_id(1)

    @pl.when(k == 0)
    def _init():
        sx_ref[...] = jnp.zeros_like(sx_ref)
        sy_ref[...] = jnp.zeros_like(sy_ref)
        sxy_ref[...] = jnp.zeros_like(sxy_ref)
        sx2_ref[...] = jnp.zeros_like(sx2_ref)
        sy2_ref[...] = jnp.zeros_like(sy2_ref)

    # Per-tile upcast only (DMA buffers stay in the input dtype).
    x = preds_ref[...].astype(jnp.float32)   # (TB, TT)
    y = labels_ref[...].astype(jnp.float32)  # (TB, TT)

    if ragged_t:
        # Static branch: only emitted when T is not a multiple of TT. Columns
        # beyond the true T (undefined contents of the ragged tile) are zeroed
        # so they do not perturb the running sums.
        col = jax.lax.broadcasted_iota(jnp.int32, x.shape, 1) + k * TT
        valid = col < T
        zero = jnp.float32(0.0)
        x = jnp.where(valid, x, zero)
        y = jnp.where(valid, y, zero)

    # Lane-aligned 128-wide static slices (tile-boundary aligned -> no
    # relayout). Tree-accumulate per-lane-group partial sums on the VPU only;
    # the cross-lane (128 -> 1) reduce is deferred to the epilogue.
    xj = x[:, 0:128]
    yj = y[:, 0:128]
    px, py = xj, yj
    pxy, pxx, pyy = xj * yj, xj * xj, yj * yj
    for j in range(1, nseg):
        xj = x[:, j * 128:(j + 1) * 128]
        yj = y[:, j * 128:(j + 1) * 128]
        px = px + xj
        py = py + yj
        pxy = pxy + xj * yj
        pxx = pxx + xj * xj
        pyy = pyy + yj * yj

    sx_ref[...] += px
    sy_ref[...] += py
    sxy_ref[...] += pxy
    sx2_ref[...] += pxx
    sy2_ref[...] += pyy

    @pl.when(k == pl.num_programs(1) - 1)
    def _finalize():
        Tf = jnp.float32(T)
        sum_x = jnp.sum(sx_ref[...], axis=1, keepdims=True)    # (TB, 1)
        sum_y = jnp.sum(sy_ref[...], axis=1, keepdims=True)
        sum_xy = jnp.sum(sxy_ref[...], axis=1, keepdims=True)
        sum_x2 = jnp.sum(sx2_ref[...], axis=1, keepdims=True)
        sum_y2 = jnp.sum(sy2_ref[...], axis=1, keepdims=True)

        denom = (Tf * sum_x2 - sum_x * sum_x) * (Tf * sum_y2 - sum_y * sum_y)
        denom = jnp.maximum(denom, jnp.float32(1e-8))

        # rsqrt runs on the otherwise-idle EUP slot; matches num/sqrt(denom)
        # to within a ulp. Epsilon placement follows the PyTorch reference:
        # loss = 1 - (r + 1e-8).
        r = (Tf * sum_xy - sum_x * sum_y) * jax.lax.rsqrt(denom)
        loss_ref[...] = 1.0 - (r + jnp.float32(1e-8))


def _round_up(x, m):
    return (x + m - 1) // m * m


def neg_pearson(preds, labels, reduction: str = "mean",
                block_b: int = 256, block_t: int = None):
    assert reduction in ["mean", "sum", "none"], "Unsupported reduction type!"
    assert preds.shape == labels.shape and preds.ndim == 2
    B, T = preds.shape
    itemsize = preds.dtype.itemsize

    # Default tile width targets ~2 MiB per input per grid step (so ~4 MiB of
    # input DMA/step, amortizing the ~0.35 us fixed per-step cost). bf16 input
    # blocks are half-size, so the lane extent doubles.
    if block_t is None:
        block_t = 2048 * max(1, 4 // max(1, itemsize))

    # Respect the (8, 128) tiling rule; never exceed the (rounded-up) extents.
    TB = min(_round_up(block_b, 8), _round_up(B, 8))
    TT = min(_round_up(block_t, 128), _round_up(T, 128))

    # v7x megacore: make sure the "parallel" B axis has >= 2 blocks whenever
    # B allows it, so both TensorCores get work (no-op on v5e/v6e).
    if B > 8 and pl.cdiv(B, TB) < 2:
        TB = max(8, _round_up(pl.cdiv(B, 2), 8))

    grid = (pl.cdiv(B, TB), pl.cdiv(T, TT))
    nseg = TT // 128
    assert nseg * 128 == TT
    ragged_t = (T % TT) != 0

    kernel = functools.partial(_neg_pearson_kernel, T=T, TT=TT, nseg=nseg,
                               ragged_t=ragged_t)

    cost = pl.CostEstimate(
        flops=8 * B * T,
        transcendentals=B,
        bytes_accessed=2 * B * T * itemsize + B * 4,
    )

    per_sample = pl.pallas_call(
        kernel,
        out_shape=jax.ShapeDtypeStruct((B, 1), jnp.float32),
        grid_spec=pltpu.PrefetchScalarGridSpec(
            num_scalar_prefetch=0,
            grid=grid,
            in_specs=[
                pl.BlockSpec((TB, TT), lambda i, k: (i, k)),
                pl.BlockSpec((TB, TT), lambda i, k: (i, k)),
            ],
            out_specs=pl.BlockSpec((TB, 1), lambda i, k: (i, 0)),
            scratch_shapes=[pltpu.VMEM((TB, 128), jnp.float32)] * 5,
        ),
        compiler_params=pltpu.CompilerParams(
            dimension_semantics=("parallel", "arbitrary"),
            vmem_limit_bytes=32 * 1024 * 1024),
        cost_estimate=cost,
    )(preds, labels)

    loss = per_sample[:, 0]
    if reduction == "mean":
        return jnp.mean(loss)
    elif reduction == "sum":
        return jnp.sum(loss)
    return loss


def _neg_pearson_ref(preds, labels, reduction: str = "mean"):
    # Pure-JAX reference mirroring the PyTorch module.
    x = preds.astype(jnp.float32)
    y = labels.astype(jnp.float32)
    T = x.shape[1]
    sum_x = jnp.sum(x, axis=1)
    sum_y = jnp.sum(y, axis=1)
    sum_xy = jnp.sum(x * y, axis=1)
    sum_x2 = jnp.sum(x * x, axis=1)
    sum_y2 = jnp.sum(y * y, axis=1)
    denom = (T * sum_x2 - sum_x ** 2) * (T * sum_y2 - sum_y ** 2)
    denom = jnp.maximum(denom, 1e-8)
    loss = 1.0 - ((T * sum_xy - sum_x * sum_y) / jnp.sqrt(denom) + 1e-8)
    if reduction == "mean":
        return jnp.mean(loss)
    elif reduction == "sum":
        return jnp.sum(loss)
    return loss


if __name__ == "__main__":
    key = jax.random.PRNGKey(0)
    k1, k2 = jax.random.split(key)

    # Deliberately ragged shapes (B not multiple of 8, T not multiple of 128)
    # to exercise the no-pad / in-kernel-mask path.
    B, T = 5, 300
    preds = jax.random.normal(k1, (B, T), dtype=jnp.float32)
    labels = 0.7 * preds + 0.3 * jax.random.normal(k2, (B, T), dtype=jnp.float32)

    # 1) Default tiles (single ragged T-tile): 'mean' reduction.
    out_mean = jax.block_until_ready(neg_pearson(preds, labels, reduction="mean"))
    ref_mean = _neg_pearson_ref(preds, labels, reduction="mean")
    assert jnp.allclose(out_mean, ref_mean, atol=1e-5, rtol=1e-5), (out_mean, ref_mean)

    # 2) Small forced T tiles so the grid accumulates over multiple steps with
    #    a ragged final tile: 'none' reduction (per-sample losses).
    out_none = jax.block_until_ready(
        neg_pearson(preds, labels, reduction="none", block_t=128))
    ref_none = _neg_pearson_ref(preds, labels, reduction="none")
    assert out_none.shape == (B,)
    assert jnp.allclose(out_none, ref_none, atol=1e-5, rtol=1e-5), (out_none, ref_none)

    # 3) 'sum' reduction with multi-step accumulation as well.
    out_sum = jax.block_until_ready(
        neg_pearson(preds, labels, reduction="sum", block_t=128))
    ref_sum = _neg_pearson_ref(preds, labels, reduction="sum")
    assert jnp.allclose(out_sum, ref_sum, atol=1e-5, rtol=1e-5), (out_sum, ref_sum)

    # 4) bf16 inputs, B > 8: exercises the multi-B-tile split (v7x megacore
    #    path) with a ragged final B tile, per-tile f32 upcast, bf16-sized DMA.
    k3, k4 = jax.random.split(k2)
    B2, T2 = 24, 512
    p2 = jax.random.normal(k3, (B2, T2), dtype=jnp.float32).astype(jnp.bfloat16)
    l2 = (0.5 * p2.astype(jnp.float32)
          + 0.5 * jax.random.normal(k4, (B2, T2), dtype=jnp.float32)).astype(jnp.bfloat16)
    out2 = jax.block_until_ready(neg_pearson(p2, l2, reduction="none"))
    ref2 = _neg_pearson_ref(p2, l2, reduction="none")
    assert out2.shape == (B2,)
    assert jnp.allclose(out2, ref2, atol=1e-4, rtol=1e-4), (out2, ref2)

    print("KERNEL_OK")
</pallas_src>

<mosaic_0001>
module attributes {stable_mosaic.version = 11 : i64} {
  func.func @_neg_pearson_kernel(%arg0: i32, %arg1: i32, %arg2: memref<8x384xf32, #tpu.memory_space<vmem>>, %arg3: memref<8x384xf32, #tpu.memory_space<vmem>>, %arg4: memref<8x1xf32, #tpu.memory_space<vmem>>, %arg5: memref<8x128xf32, #tpu.memory_space<vmem>>, %arg6: memref<8x128xf32, #tpu.memory_space<vmem>>, %arg7: memref<8x128xf32, #tpu.memory_space<vmem>>, %arg8: memref<8x128xf32, #tpu.memory_space<vmem>>, %arg9: memref<8x128xf32, #tpu.memory_space<vmem>>) attributes {dimension_semantics = [#tpu.dimension_semantics<parallel>, #tpu.dimension_semantics<arbitrary>], iteration_bounds = array<i64: 1, 1>, scalar_prefetch = 0 : i64, scratch_operands = 5 : i64, tpu.core_type = #tpu.core_type<tc>, window_params = [{transform_indices = @transform_0, window_bounds = array<i64: 8, 384>}, {transform_indices = @transform_1, window_bounds = array<i64: 8, 384>}, {transform_indices = @transform_2, window_bounds = array<i64: 8, 1>}]} {
    %c0_i32 = arith.constant 0 : i32
    %0 = arith.cmpi eq, %arg1, %c0_i32 : i32
    %1 = arith.extui %0 : i1 to i32
    %c0_i32_0 = arith.constant 0 : i32
    %2 = arith.cmpi ne, %1, %c0_i32_0 : i32
    scf.if %2 {
      %cst_27 = arith.constant 0.000000e+00 : f32
      %58 = vector.broadcast %cst_27 : f32 to vector<8x128xf32>
      %c0_28 = arith.constant 0 : index
      %c0_29 = arith.constant 0 : index
      %59 = vector.load %arg5[%c0_28, %c0_29] : memref<8x128xf32, #tpu.memory_space<vmem>>, vector<8x128xf32>
      tpu.vector_store %arg5[%c0_28, %c0_29], %58 {strides = array<i32>} : memref<8x128xf32, #tpu.memory_space<vmem>>, vector<8x128xf32>,
      %cst_30 = arith.constant 0.000000e+00 : f32
      %60 = vector.broadcast %cst_30 : f32 to vector<8x128xf32>
      %c0_31 = arith.constant 0 : index
      %c0_32 = arith.constant 0 : index
      %61 = vector.load %arg6[%c0_31, %c0_32] : memref<8x128xf32, #tpu.memory_space<vmem>>, vector<8x128xf32>
      tpu.vector_store %arg6[%c0_31, %c0_32], %60 {strides = array<i32>} : memref<8x128xf32, #tpu.memory_space<vmem>>, vector<8x128xf32>,
      %cst_33 = arith.constant 0.000000e+00 : f32
      %62 = vector.broadcast %cst_33 : f32 to vector<8x128xf32>
      %c0_34 = arith.constant 0 : index
      %c0_35 = arith.constant 0 : index
      %63 = vector.load %arg7[%c0_34, %c0_35] : memref<8x128xf32, #tpu.memory_space<vmem>>, vector<8x128xf32>
      tpu.vector_store %arg7[%c0_34, %c0_35], %62 {strides = array<i32>} : memref<8x128xf32, #tpu.memory_space<vmem>>, vector<8x128xf32>,
      %cst_36 = arith.constant 0.000000e+00 : f32
      %64 = vector.broadcast %cst_36 : f32 to vector<8x128xf32>
      %c0_37 = arith.constant 0 : index
      %c0_38 = arith.constant 0 : index
      %65 = vector.load %arg8[%c0_37, %c0_38] : memref<8x128xf32, #tpu.memory_space<vmem>>, vector<8x128xf32>
      tpu.vector_store %arg8[%c0_37, %c0_38], %64 {strides = array<i32>} : memref<8x128xf32, #tpu.memory_space<vmem>>, vector<8x128xf32>,
      %cst_39 = arith.constant 0.000000e+00 : f32
      %66 = vector.broadcast %cst_39 : f32 to vector<8x128xf32>
      %c0_40 = arith.constant 0 : index
      %c0_41 = arith.constant 0 : index
      %67 = vector.load %arg9[%c0_40, %c0_41] : memref<8x128xf32, #tpu.memory_space<vmem>>, vector<8x128xf32>
      tpu.vector_store %arg9[%c0_40, %c0_41], %66 {strides = array<i32>} : memref<8x128xf32, #tpu.memory_space<vmem>>, vector<8x128xf32>,
    } else {
    }
    %c0 = arith.constant 0 : index
    %c0_1 = arith.constant 0 : index
    %3 = vector.load %arg2[%c0, %c0_1] : memref<8x384xf32, #tpu.memory_space<vmem>>, vector<8x384xf32>
    %c0_2 = arith.constant 0 : index
    %c0_3 = arith.constant 0 : index
    %4 = vector.load %arg3[%c0_2, %c0_3] : memref<8x384xf32, #tpu.memory_space<vmem>>, vector<8x384xf32>
    %5 = tpu.iota {dimensions = array<i32: 1>} : vector<8x384xi32>
    %c384_i32 = arith.constant 384 : i32
    %6 = arith.muli %arg1, %c384_i32 : i32
    %7 = vector.broadcast %6 : i32 to vector<8x384xi32>
    %8 = arith.addi %5, %7 : vector<8x384xi32>
    %c300_i32 = arith.constant 300 : i32
    %9 = vector.broadcast %c300_i32 : i32 to vector<8x384xi32>
    %10 = arith.cmpi slt, %8, %9 : vector<8x384xi32>
    %cst = arith.constant 0.000000e+00 : f32
    %11 = vector.broadcast %cst : f32 to vector<8x384xf32>
    %12 = arith.select %10, %3, %11 : vector<8x384xi1>, vector<8x384xf32>
    %cst_4 = arith.constant 0.000000e+00 : f32
    %13 = vector.broadcast %cst_4 : f32 to vector<8x384xf32>
    %14 = arith.select %10, %4, %13 : vector<8x384xi1>, vector<8x384xf32>
    %15 = vector.extract_strided_slice %12 {offsets = [0, 0], sizes = [8, 128], strides = [1, 1]} : vector<8x384xf32> to vector<8x128xf32>
    %16 = vector.extract_strided_slice %14 {offsets = [0, 0], sizes = [8, 128], strides = [1, 1]} : vector<8x384xf32> to vector<8x128xf32>
    %17 = arith.mulf %15, %16 : vector<8x128xf32>
    %18 = arith.mulf %15, %15 : vector<8x128xf32>
    %19 = arith.mulf %16, %16 : vector<8x128xf32>
    %20 = vector.extract_strided_slice %12 {offsets = [0, 128], sizes = [8, 128], strides = [1, 1]} : vector<8x384xf32> to vector<8x128xf32>
    %21 = vector.extract_strided_slice %14 {offsets = [0, 128], sizes = [8, 128], strides = [1, 1]} : vector<8x384xf32> to vector<8x128xf32>
    %22 = arith.addf %15, %20 : vector<8x128xf32>
    %23 = arith.addf %16, %21 : vector<8x128xf32>
    %24 = arith.mulf %20, %21 : vector<8x128xf32>
    %25 = arith.addf %17, %24 : vector<8x128xf32>
    %26 = arith.mulf %20, %20 : vector<8x128xf32>
    %27 = arith.addf %18, %26 : vector<8x128xf32>
    %28 = arith.mulf %21, %21 : vector<8x128xf32>
    %29 = arith.addf %19, %28 : vector<8x128xf32>
    %30 = vector.extract_strided_slice %12 {offsets = [0, 256], sizes = [8, 128], strides = [1, 1]} : vector<8x384xf32> to vector<8x128xf32>
    %31 = vector.extract_strided_slice %14 {offsets = [0, 256], sizes = [8, 128], strides = [1, 1]} : vector<8x384xf32> to vector<8x128xf32>
    %32 = arith.addf %22, %30 : vector<8x128xf32>
    %33 = arith.addf %23, %31 : vector<8x128xf32>
    %34 = arith.mulf %30, %31 : vector<8x128xf32>
    %35 = arith.addf %25, %34 : vector<8x128xf32>
    %36 = arith.mulf %30, %30 : vector<8x128xf32>
    %37 = arith.addf %27, %36 : vector<8x128xf32>
    %38 = arith.mulf %31, %31 : vector<8x128xf32>
    %39 = arith.addf %29, %38 : vector<8x128xf32>
    %c0_5 = arith.constant 0 : index
    %c0_6 = arith.constant 0 : index
    %40 = vector.load %arg5[%c0_5, %c0_6] : memref<8x128xf32, #tpu.memory_space<vmem>>, vector<8x128xf32>
    %41 = arith.addf %40, %32 : vector<8x128xf32>
    %c0_7 = arith.constant 0 : index
    %c0_8 = arith.constant 0 : index
    %42 = vector.load %arg5[%c0_7, %c0_8] : memref<8x128xf32, #tpu.memory_space<vmem>>, vector<8x128xf32>
    tpu.vector_store %arg5[%c0_7, %c0_8], %41 {strides = array<i32>} : memref<8x128xf32, #tpu.memory_space<vmem>>, vector<8x128xf32>,
    %c0_9 = arith.constant 0 : index
    %c0_10 = arith.constant 0 : index
    %43 = vector.load %arg6[%c0_9, %c0_10] : memref<8x128xf32, #tpu.memory_space<vmem>>, vector<8x128xf32>
    %44 = arith.addf %43, %33 : vector<8x128xf32>
    %c0_11 = arith.constant 0 : index
    %c0_12 = arith.constant 0 : index
    %45 = vector.load %arg6[%c0_11, %c0_12] : memref<8x128xf32, #tpu.memory_space<vmem>>, vector<8x128xf32>
    tpu.vector_store %arg6[%c0_11, %c0_12], %44 {strides = array<i32>} : memref<8x128xf32, #tpu.memory_space<vmem>>, vector<8x128xf32>,
    %c0_13 = arith.constant 0 : index
    %c0_14 = arith.constant 0 : index
    %46 = vector.load %arg7[%c0_13, %c0_14] : memref<8x128xf32, #tpu.memory_space<vmem>>, vector<8x128xf32>
    %47 = arith.addf %46, %35 : vector<8x128xf32>
    %c0_15 = arith.constant 0 : index
    %c0_16 = arith.constant 0 : index
    %48 = vector.load %arg7[%c0_15, %c0_16] : memref<8x128xf32, #tpu.memory_space<vmem>>, vector<8x128xf32>
    tpu.vector_store %arg7[%c0_15, %c0_16], %47 {strides = array<i32>} : memref<8x128xf32, #tpu.memory_space<vmem>>, vector<8x128xf32>,
    %c0_17 = arith.constant 0 : index
    %c0_18 = arith.constant 0 : index
    %49 = vector.load %arg8[%c0_17, %c0_18] : memref<8x128xf32, #tpu.memory_space<vmem>>, vector<8x128xf32>
    %50 = arith.addf %49, %37 : vector<8x128xf32>
    %c0_19 = arith.constant 0 : index
    %c0_20 = arith.constant 0 : index
    %51 = vector.load %arg8[%c0_19, %c0_20] : memref<8x128xf32, #tpu.memory_space<vmem>>, vector<8x128xf32>
    tpu.vector_store %arg8[%c0_19, %c0_20], %50 {strides = array<i32>} : memref<8x128xf32, #tpu.memory_space<vmem>>, vector<8x128xf32>,
    %c0_21 = arith.constant 0 : index
    %c0_22 = arith.constant 0 : index
    %52 = vector.load %arg9[%c0_21, %c0_22] : memref<8x128xf32, #tpu.memory_space<vmem>>, vector<8x128xf32>
    %53 = arith.addf %52, %39 : vector<8x128xf32>
    %c0_23 = arith.constant 0 : index
    %c0_24 = arith.constant 0 : index
    %54 = vector.load %arg9[%c0_23, %c0_24] : memref<8x128xf32, #tpu.memory_space<vmem>>, vector<8x128xf32>
    tpu.vector_store %arg9[%c0_23, %c0_24], %53 {strides = array<i32>} : memref<8x128xf32, #tpu.memory_space<vmem>>, vector<8x128xf32>,
    %c0_i32_25 = arith.constant 0 : i32
    %55 = arith.cmpi eq, %arg1, %c0_i32_25 : i32
    %56 = arith.extui %55 : i1 to i32
    %c0_i32_26 = arith.constant 0 : i32
    %57 = arith.cmpi ne, %56, %c0_i32_26 : i32
    scf.if %57 {
      %c0_27 = arith.constant 0 : index
      %c0_28 = arith.constant 0 : index
      %58 = vector.load %arg5[%c0_27, %c0_28] : memref<8x128xf32, #tpu.memory_space<vmem>>, vector<8x128xf32>
      %cst_29 = arith.constant dense<0.000000e+00> : vector<8xf32>
      %59 = vector.multi_reduction <add>, %58, %cst_29 [1] : vector<8x128xf32> to vector<8xf32>
      %60 = vector.shape_cast %59 : vector<8xf32> to vector<8x1xf32>
      %c0_30 = arith.constant 0 : index
      %c0_31 = arith.constant 0 : index
      %61 = vector.load %arg6[%c0_30, %c0_31] : memref<8x128xf32, #tpu.memory_space<vmem>>, vector<8x128xf32>
      %cst_32 = arith.constant dense<0.000000e+00> : vector<8xf32>
      %62 = vector.multi_reduction <add>, %61, %cst_32 [1] : vector<8x128xf32> to vector<8xf32>
      %63 = vector.shape_cast %62 : vector<8xf32> to vector<8x1xf32>
      %c0_33 = arith.constant 0 : index
      %c0_34 = arith.constant 0 : index
      %64 = vector.load %arg7[%c0_33, %c0_34] : memref<8x128xf32, #tpu.memory_space<vmem>>, vector<8x128xf32>
      %cst_35 = arith.constant dense<0.000000e+00> : vector<8xf32>
      %65 = vector.multi_reduction <add>, %64, %cst_35 [1] : vector<8x128xf32> to vector<8xf32>
      %66 = vector.shape_cast %65 : vector<8xf32> to vector<8x1xf32>
      %c0_36 = arith.constant 0 : index
      %c0_37 = arith.constant 0 : index
      %67 = vector.load %arg8[%c0_36, %c0_37] : memref<8x128xf32, #tpu.memory_space<vmem>>, vector<8x128xf32>
      %cst_38 = arith.constant dense<0.000000e+00> : vector<8xf32>
      %68 = vector.multi_reduction <add>, %67, %cst_38 [1] : vector<8x128xf32> to vector<8xf32>
      %69 = vector.shape_cast %68 : vector<8xf32> to vector<8x1xf32>
      %c0_39 = arith.constant 0 : index
      %c0_40 = arith.constant 0 : index
      %70 = vector.load %arg9[%c0_39, %c0_40] : memref<8x128xf32, #tpu.memory_space<vmem>>, vector<8x128xf32>
      %cst_41 = arith.constant dense<0.000000e+00> : vector<8xf32>
      %71 = vector.multi_reduction <add>, %70, %cst_41 [1] : vector<8x128xf32> to vector<8xf32>
      %72 = vector.shape_cast %71 : vector<8xf32> to vector<8x1xf32>
      %cst_42 = arith.constant 3.000000e+02 : f32
      %73 = vector.broadcast %cst_42 : f32 to vector<8x1xf32>
      %74 = arith.mulf %73, %69 : vector<8x1xf32>
      %75 = arith.mulf %60, %60 : vector<8x1xf32>
      %76 = arith.subf %74, %75 : vector<8x1xf32>
      %cst_43 = arith.constant 3.000000e+02 : f32
      %77 = vector.broadcast %cst_43 : f32 to vector<8x1xf32>
      %78 = arith.mulf %77, %72 : vector<8x1xf32>
      %79 = arith.mulf %63, %63 : vector<8x1xf32>
      %80 = arith.subf %78, %79 : vector<8x1xf32>
      %81 = arith.mulf %76, %80 : vector<8x1xf32>
      %cst_44 = arith.constant 9.99999993E-9 : f32
      %82 = vector.broadcast %cst_44 : f32 to vector<8x1xf32>
      %83 = arith.maximumf %81, %82 : vector<8x1xf32>
      %cst_45 = arith.constant 3.000000e+02 : f32
      %84 = vector.broadcast %cst_45 : f32 to vector<8x1xf32>
      %85 = arith.mulf %84, %66 : vector<8x1xf32>
      %86 = arith.mulf %60, %63 : vector<8x1xf32>
      %87 = arith.subf %85, %86 : vector<8x1xf32>
      %88 = math.rsqrt %83 : vector<8x1xf32>
      %89 = arith.mulf %87, %88 : vector<8x1xf32>
      %cst_46 = arith.constant 9.99999993E-9 : f32
      %90 = vector.broadcast %cst_46 : f32 to vector<8x1xf32>
      %91 = arith.addf %89, %90 : vector<8x1xf32>
      %cst_47 = arith.constant 1.000000e+00 : f32
      %92 = vector.broadcast %cst_47 : f32 to vector<8x1xf32>
      %93 = arith.subf %92, %91 : vector<8x1xf32>
      %c0_48 = arith.constant 0 : index
      %c0_49 = arith.constant 0 : index
      %94 = vector.load %arg4[%c0_48, %c0_49] : memref<8x1xf32, #tpu.memory_space<vmem>>, vector<8x1xf32>
      tpu.vector_store %arg4[%c0_48, %c0_49], %93 {strides = array<i32>} : memref<8x1xf32, #tpu.memory_space<vmem>>, vector<8x1xf32>,
    } else {
    }
    return
  }
  func.func @transform_0(%arg0: i32, %arg1: i32) -> (i32, i32) {
    %c0_i32 = arith.constant 0 : i32
    return %arg0, %arg1 : i32, i32
  }
  func.func @transform_1(%arg0: i32, %arg1: i32) -> (i32, i32) {
    %c0_i32 = arith.constant 0 : i32
    return %arg0, %arg1 : i32, i32
  }
  func.func @transform_2(%arg0: i32, %arg1: i32) -> (i32, i32) {
    %c0_i32 = arith.constant 0 : i32
    %c0_i32_0 = arith.constant 0 : i32
    return %arg0, %c0_i32 : i32, i32
  }
}

</mosaic_0001>

<bundles_post_ra>
// kernel: tpu_custom_call.1
= control target key start
LH: loop header
LB: loop body
LE: loop exit
PB: predicated region body
PF: predicated region fallthrough
CT: control target
= control target key end

     0   :  { %7 = vsyncpa [#allocation8], 0  ;;  %s239_s0 = inlined_call_operand.hbm [shape: f32[5,300], index: 0, kind: input, shape index: {}]   ;;  %s240_s1 = inlined_call_operand.hbm [shape: f32[5,300], index: 1, kind: input, shape index: {}]   ;;  %s241_s2 = inlined_call_operand.vmem [shape: f32[5,1], index: 2, kind: output, shape index: {}]  }
   0x1   :  { %8 = vsyncpa [#allocation10], 0  ;;  %s195_s9 = smov [#allocation7]   ;;  %s196_s11 = smov [#allocation9]  }
   0x2   :  { %s15_s10 = sshll.u32 %s195_s9, 4  ;;  %s25_s12 = sshll.u32 %s196_s11, 4  ;;  %s16_s10 = int_to_ptr.vmem [resolvable:$true] %s15_s10  ;;  %s26_s12 = int_to_ptr.vmem [resolvable:$true] %s25_s12 }
   0x3   :  { %s147_s15 = scalar_lea.hbm %s239_s0, 384 }
   0x4   :  { %p148_p0 = scmp.ne.s32.totalorder %s239_s0, %s147_s15  ;;  %p151_p1 = scmp.lt.u32.totalorder %s147_s15, %s239_s0 }
   0x6   :  { %p153_p2 = pnand %p151_p1, %p148_p0 }
   0x8   :  { %156 = shalt.err (!%p153_p2)
}
   0x9   :  { %s157_s20 = scalar_lea.vmem %s16_s10, 384  ;;  %p162_p4 = scmp.lt.s32.totalorder %s16_s10, %s16_s10 }
   0xa   :  { %p158_p3 = scmp.ne.s32.totalorder %s16_s10, %s157_s20  ;;  %p163_p5 = scmp.lt.s32.totalorder %s157_s20, %s157_s20 }
   0xc   :  { %p164_p6 = por %p163_p5, %p162_p4 }
   0xe   :  { %p165_p7 = pnand %p164_p6, %p158_p3 }
  0x10   :  { %168 = shalt.err (!%p165_p7)
}
  0x11   :  { %18 = dma.hbm_to_vmem [thread:$0]  %s239_s0, 384, %s16_s10, [#allocation8]  }
  0x12   :  { %s169_s25 = scalar_lea.hbm %s240_s1, 384 }
  0x13   :  { %p170_p8 = scmp.ne.s32.totalorder %s240_s1, %s169_s25  ;;  %p173_p9 = scmp.lt.u32.totalorder %s169_s25, %s240_s1 }
  0x15   :  { %p175_p10 = pnand %p173_p9, %p170_p8 }
  0x17   :  { %178 = shalt.err (!%p175_p10)
}
  0x18   :  { %s179_s30 = scalar_lea.vmem %s26_s12, 384  ;;  %p184_p12 = scmp.lt.s32.totalorder %s26_s12, %s26_s12 }
  0x19   :  { %p180_p11 = scmp.ne.s32.totalorder %s26_s12, %s179_s30  ;;  %p185_p13 = scmp.lt.s32.totalorder %s179_s30, %s179_s30 }
  0x1b   :  { %p186_p0 = por %p185_p13, %p184_p12 }
  0x1d   :  { %p187_p1 = pnand %p186_p0, %p180_p11 }
  0x1f   :  { %190 = shalt.err (!%p187_p1)
}
  0x20   :  { %28 = dma.hbm_to_vmem [thread:$0]  %s240_s1, 384, %s26_s12, [#allocation10]  }
  0x21   :  { %191 = dma.done.wait [#allocation8], 384  }
  0x22   :  { %192 = vsyncadd [#allocation8], 4294966912 }
  0x23   :  { %193 = dma.done.wait [#allocation10], 384  }
  0x24   :  { %194 = vsyncadd [#allocation10], 4294966912  ;;  %v50_v0 = vlaneseq  ;;  %v44_v3 = vld [vmem:[#allocation7] sm:$0xff]  ;;  %v45_v4 = vld [vmem:[#allocation7 + $0x8] sm:$0xff]  ;;  %vm135_vm1 = vcmask 7168  }
  0x25   :  { %v46_v5 = vld [vmem:[#allocation7 + $0x10] sm:$0xff]  ;;  %v71_v7 = vadd.f32 %v45_v4, %v44_v3  ;;  %v69_v8 = vmul.f32 %v44_v3, %v44_v3  ;;  %v75_v9 = vmul.f32 %v45_v4, %v45_v4  ;;  %v47_v10 = vld [vmem:[#allocation9] sm:$0xff]  ;;  %v48_v11 = vld [vmem:[#allocation9 + $0x8] sm:$0xff] }
  0x26   :  { %v51_v1 = vand.u32 127, %v50_v0  ;;  %v49_v12 = vld [vmem:[#allocation9 + $0x10] sm:$0xff]  ;;  %v72_v15 = vadd.f32 %v48_v11, %v47_v10  ;;  %v70_v16 = vmul.f32 %v47_v10, %v47_v10  ;;  %v77_v19 = vmul.f32 %v48_v11, %v48_v11 }
  0x27   :  { %v76_v18 = vadd.f32 %v75_v9, %v69_v8  ;;  %v68_v21 = vmul.f32 %v47_v10, %v44_v3  ;;  %v73_v22 = vmul.f32 %v48_v11, %v45_v4 }
  0x28   :  { %v53_v2 = vadd.s32 256, %v51_v1  ;;  %v78_v25 = vadd.f32 %v77_v19, %v70_v16 }
  0x29   :  { %v74_v27 = vadd.f32 %v73_v22, %v68_v21 }
  0x2a   :  { %vm61_vm0 = vcmp.lt.s32.totalorder %v53_v2, 300 }
  0x2b   :  { %v64_v6 = vsel %vm61_vm0, %v46_v5, 0.0  ;;  %v67_v14 = vsel %vm61_vm0, %v49_v12, 0.0 }
  0x2c   :  { %v83_v13 = vmul.f32 %v64_v6, %v64_v6  ;;  %v79_v17 = vadd.f32 %v71_v7, %v64_v6  ;;  %v85_v20 = vmul.f32 %v67_v14, %v67_v14  ;;  %v80_v24 = vadd.f32 %v72_v15, %v67_v14 }
  0x2d   :  { %v81_v26 = vmul.f32 %v67_v14, %v64_v6 }
  0x2e   :  { %106 = vadd.xlane.f32.xlu0 %v79_v17  ;;  %v84_v23 = vadd.f32 %v83_v13, %v76_v18  ;;  %v86_v28 = vadd.f32 %v85_v20, %v78_v25 }
  0x2f   :  { %v82_v29 = vadd.f32 %v81_v26, %v74_v27 }
  0x30   :  { %115 = vadd.xlane.f32.xlu1 %v84_v23 }
  0x32   :  { %109 = vadd.xlane.f32.xlu0 %v80_v24 }
  0x34   :  { %118 = vadd.xlane.f32.xlu1 %v86_v28 }
  0x36   :  { %112 = vadd.xlane.f32.xlu0 %v82_v29 }
  0xbb   :  { %v107_v30 = vpop.xlane.xlu0 %106 }
  0xbc   :  { %v121_v33 = vmul.f32 %v107_v30, %v107_v30 }
  0xbd   :  { %v116_v31 = vpop.xlane.xlu1 %115 }
  0xbe   :  { %v120_v34 = vmul.f32 300.0, %v116_v31 }
  0xbf   :  { %v110_v32 = vpop.xlane.xlu0 %109 }
  0xc0   :  { %v124_v35 = vmul.f32 %v110_v32, %v110_v32  ;;  %v122_v38 = vsub.f32 %v120_v34, %v121_v33  ;;  %v129_v44 = vmul.f32 %v110_v32, %v107_v30 }
  0xc1   :  { %v119_v36 = vpop.xlane.xlu1 %118 }
  0xc2   :  { %v123_v37 = vmul.f32 300.0, %v119_v36 }
  0xc3   :  { %v113_v42 = vpop.xlane.xlu0 %112 }
  0xc4   :  { %v125_v39 = vsub.f32 %v123_v37, %v124_v35  ;;  %v128_v43 = vmul.f32 300.0, %v113_v42 }
  0xc6   :  { %v126_v40 = vmul.f32 %v125_v39, %v122_v38  ;;  %v130_v45 = vsub.f32 %v128_v43, %v129_v44 }
  0xc8   :  { %v127_v41 = vmax.f32 %v126_v40, 1e-08 }
  0xca   :  { %145 = vrsqrt.f32 %v127_v41 }
  0xd4   :  { %v146_v46 = vpop.eup %145 }
  0xd5   :  { %v132_v47 = vmul.f32 %v146_v46, %v130_v45 }
  0xd7   :  { %v133_v48 = vadd.f32 1e-08, %v132_v47 }
  0xd9   :  { %v134_v49 = vsub.f32 1.0, %v133_v48 }
  0xdb   :  { %136 = vst.msk [vmem:[%s241_s2] sm:$0xff] %vm135_vm1, %v134_v49 }
  0xdc   :  { %141 = vsyncpa [#allocation8], 1 }
  0xdd   :  { %142 = vsyncpa [#allocation10], 1 }

</bundles_post_ra>
